<compile_context>
chip_gen: v7x
topology: tpu7x:2x2x1
jax: 0.10.0
libtpu: 0.0.40
codegen_flags: <defaults>
</compile_context>

<pallas_src>
import jax
import jax.numpy as jnp
from jax.experimental import pallas as pl
from jax.experimental.pallas import tpu as pltpu


NEG_SLOPE = 0.0  # the module uses LeakyReLU(negative_slope=0)


def _round_up(x: int, m: int) -> int:
    return ((x + m - 1) // m) * m


def _cdiv(a: int, b: int) -> int:
    return -(-a // b)


def _physical_vmem_bytes() -> int:
    """Per-core VMEM capacity; conservative 64 MiB (v7x) if the query fails."""
    try:
        info = pltpu.get_tpu_info()
        cap = getattr(info, "vmem_capacity_bytes", None)
        if cap:
            return int(cap)
    except Exception:
        pass
    return 64 << 20


def mlp_kernel(x_ref, w1_ref, w2_ref, o_ref, acc_ref):
    c = pl.program_id(1)  # reduction axis over I-chunks (last grid axis)

    @pl.when(c == 0)
    def _():
        acc_ref[...] = jnp.zeros_like(acc_ref)

    # c_fc chunk: (TILE_M, Hp) @ (Hp, TILE_I) on the MXU, f32 accumulation.
    h = jnp.dot(x_ref[...], w1_ref[...], preferred_element_type=jnp.float32)
    # LeakyReLU; negative_slope == 0 folds to a single VPU max at trace time.
    if NEG_SLOPE == 0.0:
        h = jnp.maximum(h, 0.0)
    else:
        h = jnp.where(h >= 0.0, h, h * NEG_SLOPE)
    # c_proj chunk: accumulate (TILE_M, TILE_I) @ (TILE_I, Hp) into f32 scratch.
    acc_ref[...] += jnp.dot(h.astype(w2_ref.dtype), w2_ref[...],
                            preferred_element_type=jnp.float32)

    @pl.when(c == pl.num_programs(1) - 1)
    def _():
        o_ref[...] = acc_ref[...].astype(o_ref.dtype)


def prepare_mlp_weights(w1, w2, *, compute_dtype=jnp.bfloat16, lane_align=128):
    """Pad/cast the static weights once (hoisted out of the per-call path).

    w1: (H, I) == c_fc.weight, w2: (I, H) == c_proj.weight.
    Zero-padding is exact: padded W1 columns / W2 rows & columns are zero.
    """
    H, I = w1.shape
    assert w2.shape == (I, H), (w1.shape, w2.shape)
    compute_dtype = jnp.dtype(compute_dtype)
    Hp = _round_up(H, lane_align)
    Ip = _round_up(I, lane_align)
    if (Hp, Ip) == (H, I):
        w1p = w1.astype(compute_dtype)
        w2p = w2.astype(compute_dtype)
    else:
        w1p = jnp.zeros((Hp, Ip), compute_dtype).at[:H, :I].set(
            w1.astype(compute_dtype))
        w2p = jnp.zeros((Ip, Hp), compute_dtype).at[:I, :H].set(
            w2.astype(compute_dtype))
    return dict(w1p=w1p, w2p=w2p, H=H, I=I, Hp=Hp, Ip=Ip,
                compute_dtype=compute_dtype)


def _choose_tiles(M, Hp, Ip, itm, out_itm, tile_m, vmem_budget):
    """Pick (TILE_M, TILE_I) so double-buffered tiles + scratch fit the budget."""
    tile_m_cap = max(8, (tile_m // 8) * 8)
    TILE_M = min(tile_m_cap, _round_up(M, 8))
    # Keep >= 2 M-steps for mid/large M so the "parallel" axis feeds both
    # v7x TensorCores.
    if _cdiv(M, TILE_M) == 1 and M > 256:
        TILE_M = _round_up(_cdiv(M, 2), 8)

    def budget(tm):
        fixed = (2 * tm * Hp * itm        # x tile (double-buffered)
                 + 2 * tm * Hp * out_itm  # out tile (double-buffered)
                 + tm * Hp * 4)           # f32 accumulator scratch
        per_i = 4 * Hp * itm + tm * 4     # W1 col + W2 row (x2 bufs) + h col
        return vmem_budget - fixed, per_i

    avail, per_i = budget(TILE_M)
    while avail < 128 * per_i and TILE_M > 64:
        TILE_M = max(64, _round_up(TILE_M // 2, 8))
        avail, per_i = budget(TILE_M)

    max_ti = max(128, int(avail // per_i)) if avail > 0 else 128
    # TILE_I: largest multiple of 128 that divides Ip and fits the budget, so
    # reduction chunks never read garbage past Ip (contraction correctness).
    q = Ip // 128
    best = 1
    for d in range(1, q + 1):
        if q % d == 0 and 128 * d <= max_ti:
            best = d
    TILE_I = 128 * best
    return TILE_M, TILE_I


def mlp_forward_prepared(x, prep, *, tile_m=512, out_dtype=None):
    """x: (..., H); prep: result of prepare_mlp_weights.  Returns (..., H).

    out_dtype defaults to x.dtype; pass jnp.bfloat16 to halve writeback bytes
    when downstream tolerates it.
    """
    H, Hp, Ip = prep["H"], prep["Hp"], prep["Ip"]
    compute_dtype = prep["compute_dtype"]
    w1p, w2p = prep["w1p"], prep["w2p"]

    orig_shape = x.shape
    assert orig_shape[-1] == H, (orig_shape, H)
    if out_dtype is None:
        out_dtype = x.dtype
    x2d = x.reshape(-1, H)
    M = x2d.shape[0]

    # Only the contraction dim needs zero padding; M is handled by grid masking
    # (garbage rows in the boundary tile only produce discarded output rows).
    if Hp != H:
        xp = jnp.zeros((M, Hp), compute_dtype).at[:, :H].set(
            x2d.astype(compute_dtype))
    else:
        xp = x2d.astype(compute_dtype)   # no-op if x is already compute_dtype

    itm = jnp.dtype(compute_dtype).itemsize
    out_itm = jnp.dtype(out_dtype).itemsize
    phys_vmem = _physical_vmem_bytes()
    TILE_M, TILE_I = _choose_tiles(M, Hp, Ip, itm, out_itm, tile_m,
                                   vmem_budget=phys_vmem - (16 << 20))
    n_m = _cdiv(M, TILE_M)
    n_i = Ip // TILE_I

    # Explicit VMEM budget for the chosen tiles, with headroom; never request
    # the whole physical VMEM (leaves room for Mosaic internal scratch).
    est = (2 * TILE_M * Hp * itm
           + 2 * (Hp * TILE_I + TILE_I * Hp) * itm
           + 2 * TILE_M * Hp * out_itm
           + TILE_M * Hp * 4
           + TILE_M * TILE_I * 4)
    vmem_limit = int(max(16 << 20,
                         min(phys_vmem - (4 << 20), est + (8 << 20))))

    cost = pl.CostEstimate(
        flops=2 * 2 * M * Hp * Ip,            # two GEMMs
        transcendentals=0,
        bytes_accessed=(M * Hp * itm + 2 * Hp * Ip * itm + M * Hp * out_itm),
    )

    def build(weight_pipeline_mode):
        def wspec(shape, index_map):
            if weight_pipeline_mode is None:
                return pl.BlockSpec(shape, index_map)
            return pl.BlockSpec(shape, index_map,
                                pipeline_mode=weight_pipeline_mode)

        grid_spec = pltpu.PrefetchScalarGridSpec(
            num_scalar_prefetch=0,
            grid=(n_m, n_i),
            in_specs=[
                pl.BlockSpec((TILE_M, Hp), lambda i, c: (i, 0)),   # x tile
                wspec((Hp, TILE_I), lambda i, c: (0, c)),          # W1 I-chunk
                wspec((TILE_I, Hp), lambda i, c: (c, 0)),          # W2 I-chunk
            ],
            out_specs=pl.BlockSpec((TILE_M, Hp), lambda i, c: (i, 0)),
            scratch_shapes=[pltpu.VMEM((TILE_M, Hp), jnp.float32)],
        )
        return pl.pallas_call(
            mlp_kernel,
            out_shape=jax.ShapeDtypeStruct((M, Hp), out_dtype),
            grid_spec=grid_spec,
            compiler_params=pltpu.CompilerParams(
                dimension_semantics=("parallel", "arbitrary"),
                vmem_limit_bytes=vmem_limit,
            ),
            cost_estimate=cost,
        )

    out_p = None
    if n_i == 1 and hasattr(pl, "Buffered"):
        # Grid-invariant weights: single-buffer them to halve their VMEM cost
        # (matters most on v7x's 64 MiB).  Fall back if this JAX rejects it.
        try:
            out_p = build(pl.Buffered(1))(xp, w1p, w2p)
        except Exception:
            out_p = None
    if out_p is None:
        out_p = build(None)(xp, w1p, w2p)

    if Hp != H:
        out_p = out_p[:, :H]
    return out_p.reshape(orig_shape)


def mlp_forward(x, w1, w2, *, compute_dtype=jnp.bfloat16, tile_m=512,
                out_dtype=None):
    """Convenience wrapper; prefer prepare_mlp_weights + mlp_forward_prepared
    so the static weight padding/cast is paid once, not per call."""
    prep = prepare_mlp_weights(w1, w2, compute_dtype=compute_dtype)
    return mlp_forward_prepared(x, prep, tile_m=tile_m, out_dtype=out_dtype)


def pure_jax_ref(x, w1, w2):
    h = x.reshape(-1, x.shape[-1]) @ w1
    h = jnp.where(h >= 0.0, h, h * NEG_SLOPE)
    o = h @ w2
    return o.reshape(x.shape[:-1] + (w2.shape[1],))


if __name__ == "__main__":
    # Small shapes consistent with the module: batch=2, seq=8, hidden=32,
    # intermediate=64.
    B, S, H, I = 2, 8, 32, 64

    key = jax.random.PRNGKey(0)
    kx, kw1, kw2 = jax.random.split(key, 3)

    # MyConv1D init_type='normal' -> std=0.02 weights; bias=False -> frozen
    # zero bias (identity).  Dropout(p=0) is also an identity.
    x = jax.random.normal(kx, (B, S, H), dtype=jnp.float32)
    w1 = 0.02 * jax.random.normal(kw1, (H, I), dtype=jnp.float32)  # c_fc.weight   (nx, nf)
    w2 = 0.02 * jax.random.normal(kw2, (I, H), dtype=jnp.float32)  # c_proj.weight (nx, nf)

    ref = pure_jax_ref(x, w1, w2)

    # f32-operand path: tight match to the PyTorch fp32 forward.
    prep_f32 = prepare_mlp_weights(w1, w2, compute_dtype=jnp.float32)
    out_f32 = jax.block_until_ready(mlp_forward_prepared(x, prep_f32))
    assert out_f32.shape == (B, S, H)
    assert jnp.allclose(out_f32, ref, atol=1e-5, rtol=1e-4)

    # Default bf16-operand path (f32 accumulation): MXU-rate / half-DMA.
    prep_bf16 = prepare_mlp_weights(w1, w2)  # bf16 by default
    out_bf16 = jax.block_until_ready(mlp_forward_prepared(x, prep_bf16))
    assert out_bf16.shape == (B, S, H)
    assert jnp.allclose(out_bf16, ref, atol=5e-3, rtol=5e-2)

    # Re-use of prepared (pre-padded, pre-cast) weights across calls.
    out_bf16_2 = jax.block_until_ready(mlp_forward_prepared(x, prep_bf16))
    assert jnp.allclose(out_bf16_2, out_bf16)

    print("KERNEL_OK")
</pallas_src>

<mosaic_0001>
module attributes {stable_mosaic.version = 11 : i64} {
  func.func @mlp_kernel(%arg0: i32, %arg1: i32, %arg2: memref<16x128xf32, #tpu.memory_space<vmem>>, %arg3: memref<128x128xf32, #tpu.memory_space<vmem>>, %arg4: memref<128x128xf32, #tpu.memory_space<vmem>>, %arg5: memref<16x128xf32, #tpu.memory_space<vmem>>, %arg6: memref<16x128xf32, #tpu.memory_space<vmem>>) attributes {dimension_semantics = [#tpu.dimension_semantics<parallel>, #tpu.dimension_semantics<arbitrary>], iteration_bounds = array<i64: 1, 1>, scalar_prefetch = 0 : i64, scratch_operands = 1 : i64, tpu.core_type = #tpu.core_type<tc>, window_params = [{transform_indices = @transform_0, window_bounds = array<i64: 16, 128>}, {pipeline_mode = #tpu.pipeline_mode<synchronous>, transform_indices = @transform_1, window_bounds = array<i64: 128, 128>}, {pipeline_mode = #tpu.pipeline_mode<synchronous>, transform_indices = @transform_2, window_bounds = array<i64: 128, 128>}, {transform_indices = @transform_3, window_bounds = array<i64: 16, 128>}]} {
    %c0_i32 = arith.constant 0 : i32
    %0 = arith.cmpi eq, %arg1, %c0_i32 : i32
    %1 = arith.extui %0 : i1 to i32
    %c0_i32_0 = arith.constant 0 : i32
    %2 = arith.cmpi ne, %1, %c0_i32_0 : i32
    scf.if %2 {
      %cst_14 = arith.constant 0.000000e+00 : f32
      %16 = vector.broadcast %cst_14 : f32 to vector<16x128xf32>
      %c0_15 = arith.constant 0 : index
      %c0_16 = arith.constant 0 : index
      %17 = vector.load %arg6[%c0_15, %c0_16] : memref<16x128xf32, #tpu.memory_space<vmem>>, vector<16x128xf32>
      tpu.vector_store %arg6[%c0_15, %c0_16], %16 {strides = array<i32>} : memref<16x128xf32, #tpu.memory_space<vmem>>, vector<16x128xf32>,
    } else {
    }
    %c0 = arith.constant 0 : index
    %c0_1 = arith.constant 0 : index
    %3 = vector.load %arg2[%c0, %c0_1] : memref<16x128xf32, #tpu.memory_space<vmem>>, vector<16x128xf32>
    %c0_2 = arith.constant 0 : index
    %c0_3 = arith.constant 0 : index
    %4 = vector.load %arg3[%c0_2, %c0_3] : memref<128x128xf32, #tpu.memory_space<vmem>>, vector<128x128xf32>
    %cst = arith.constant dense<0.000000e+00> : vector<16x128xf32>
    %5 = tpu.matmul %3, %4, %cst {dimension_numbers = #tpu.dot_dimension_numbers<[1], [0], [0], [1], [0, 0, 1, 1], [], []>} : vector<16x128xf32>, vector<128x128xf32>, vector<16x128xf32> -> vector<16x128xf32>
    %cst_4 = arith.constant 0.000000e+00 : f32
    %6 = vector.broadcast %cst_4 : f32 to vector<16x128xf32>
    %7 = arith.maximumf %5, %6 : vector<16x128xf32>
    %c0_5 = arith.constant 0 : index
    %c0_6 = arith.constant 0 : index
    %8 = vector.load %arg6[%c0_5, %c0_6] : memref<16x128xf32, #tpu.memory_space<vmem>>, vector<16x128xf32>
    %c0_7 = arith.constant 0 : index
    %c0_8 = arith.constant 0 : index
    %9 = vector.load %arg4[%c0_7, %c0_8] : memref<128x128xf32, #tpu.memory_space<vmem>>, vector<128x128xf32>
    %cst_9 = arith.constant dense<0.000000e+00> : vector<16x128xf32>
    %10 = tpu.matmul %7, %9, %cst_9 {dimension_numbers = #tpu.dot_dimension_numbers<[1], [0], [0], [1], [0, 0, 1, 1], [], []>} : vector<16x128xf32>, vector<128x128xf32>, vector<16x128xf32> -> vector<16x128xf32>
    %11 = arith.addf %8, %10 : vector<16x128xf32>
    %c0_10 = arith.constant 0 : index
    %c0_11 = arith.constant 0 : index
    %12 = vector.load %arg6[%c0_10, %c0_11] : memref<16x128xf32, #tpu.memory_space<vmem>>, vector<16x128xf32>
    tpu.vector_store %arg6[%c0_10, %c0_11], %11 {strides = array<i32>} : memref<16x128xf32, #tpu.memory_space<vmem>>, vector<16x128xf32>,
    %c0_i32_12 = arith.constant 0 : i32
    %13 = arith.cmpi eq, %arg1, %c0_i32_12 : i32
    %14 = arith.extui %13 : i1 to i32
    %c0_i32_13 = arith.constant 0 : i32
    %15 = arith.cmpi ne, %14, %c0_i32_13 : i32
    scf.if %15 {
      %c0_14 = arith.constant 0 : index
      %c0_15 = arith.constant 0 : index
      %16 = vector.load %arg6[%c0_14, %c0_15] : memref<16x128xf32, #tpu.memory_space<vmem>>, vector<16x128xf32>
      %c0_16 = arith.constant 0 : index
      %c0_17 = arith.constant 0 : index
      %17 = vector.load %arg5[%c0_16, %c0_17] : memref<16x128xf32, #tpu.memory_space<vmem>>, vector<16x128xf32>
      tpu.vector_store %arg5[%c0_16, %c0_17], %16 {strides = array<i32>} : memref<16x128xf32, #tpu.memory_space<vmem>>, vector<16x128xf32>,
    } else {
    }
    return
  }
  func.func @transform_0(%arg0: i32, %arg1: i32) -> (i32, i32) {
    %c0_i32 = arith.constant 0 : i32
    %c0_i32_0 = arith.constant 0 : i32
    return %arg0, %c0_i32 : i32, i32
  }
  func.func @transform_1(%arg0: i32, %arg1: i32) -> (i32, i32) {
    %c0_i32 = arith.constant 0 : i32
    %c0_i32_0 = arith.constant 0 : i32
    return %c0_i32, %arg1 : i32, i32
  }
  func.func @transform_2(%arg0: i32, %arg1: i32) -> (i32, i32) {
    %c0_i32 = arith.constant 0 : i32
    %c0_i32_0 = arith.constant 0 : i32
    return %arg1, %c0_i32 : i32, i32
  }
  func.func @transform_3(%arg0: i32, %arg1: i32) -> (i32, i32) {
    %c0_i32 = arith.constant 0 : i32
    %c0_i32_0 = arith.constant 0 : i32
    return %arg0, %c0_i32 : i32, i32
  }
}

module attributes {stable_mosaic.version = 11 : i64} {
  func.func @mlp_kernel(%arg0: i32, %arg1: i32, %arg2: memref<16x128xf32, #tpu.memory_space<vmem>>, %arg3: memref<128x128xf32, #tpu.memory_space<vmem>>, %arg4: memref<128x128xf32, #tpu.memory_space<vmem>>, %arg5: memref<16x128xf32, #tpu.memory_space<vmem>>, %arg6: memref<16x128xf32, #tpu.memory_space<vmem>>) attributes {dimension_semantics = [#tpu.dimension_semantics<parallel>, #tpu.dimension_semantics<arbitrary>], iteration_bounds = array<i64: 1, 1>, scalar_prefetch = 0 : i64, scratch_operands = 1 : i64, tpu.core_type = #tpu.core_type<tc>, window_params = [{transform_indices = @transform_0, window_bounds = array<i64: 16, 128>}, {transform_indices = @transform_1, window_bounds = array<i64: 128, 128>}, {transform_indices = @transform_2, window_bounds = array<i64: 128, 128>}, {transform_indices = @transform_3, window_bounds = array<i64: 16, 128>}]} {
    %c0_i32 = arith.constant 0 : i32
    %0 = arith.cmpi eq, %arg1, %c0_i32 : i32
    %1 = arith.extui %0 : i1 to i32
    %c0_i32_0 = arith.constant 0 : i32
    %2 = arith.cmpi ne, %1, %c0_i32_0 : i32
    scf.if %2 {
      %cst_14 = arith.constant 0.000000e+00 : f32
      %16 = vector.broadcast %cst_14 : f32 to vector<16x128xf32>
      %c0_15 = arith.constant 0 : index
      %c0_16 = arith.constant 0 : index
      %17 = vector.load %arg6[%c0_15, %c0_16] : memref<16x128xf32, #tpu.memory_space<vmem>>, vector<16x128xf32>
      tpu.vector_store %arg6[%c0_15, %c0_16], %16 {strides = array<i32>} : memref<16x128xf32, #tpu.memory_space<vmem>>, vector<16x128xf32>,
    } else {
    }
    %c0 = arith.constant 0 : index
    %c0_1 = arith.constant 0 : index
    %3 = vector.load %arg2[%c0, %c0_1] : memref<16x128xf32, #tpu.memory_space<vmem>>, vector<16x128xf32>
    %c0_2 = arith.constant 0 : index
    %c0_3 = arith.constant 0 : index
    %4 = vector.load %arg3[%c0_2, %c0_3] : memref<128x128xf32, #tpu.memory_space<vmem>>, vector<128x128xf32>
    %cst = arith.constant dense<0.000000e+00> : vector<16x128xf32>
    %5 = tpu.matmul %3, %4, %cst {dimension_numbers = #tpu.dot_dimension_numbers<[1], [0], [0], [1], [0, 0, 1, 1], [], []>} : vector<16x128xf32>, vector<128x128xf32>, vector<16x128xf32> -> vector<16x128xf32>
    %cst_4 = arith.constant 0.000000e+00 : f32
    %6 = vector.broadcast %cst_4 : f32 to vector<16x128xf32>
    %7 = arith.maximumf %5, %6 : vector<16x128xf32>
    %c0_5 = arith.constant 0 : index
    %c0_6 = arith.constant 0 : index
    %8 = vector.load %arg6[%c0_5, %c0_6] : memref<16x128xf32, #tpu.memory_space<vmem>>, vector<16x128xf32>
    %c0_7 = arith.constant 0 : index
    %c0_8 = arith.constant 0 : index
    %9 = vector.load %arg4[%c0_7, %c0_8] : memref<128x128xf32, #tpu.memory_space<vmem>>, vector<128x128xf32>
    %cst_9 = arith.constant dense<0.000000e+00> : vector<16x128xf32>
    %10 = tpu.matmul %7, %9, %cst_9 {dimension_numbers = #tpu.dot_dimension_numbers<[1], [0], [0], [1], [0, 0, 1, 1], [], []>} : vector<16x128xf32>, vector<128x128xf32>, vector<16x128xf32> -> vector<16x128xf32>
    %11 = arith.addf %8, %10 : vector<16x128xf32>
    %c0_10 = arith.constant 0 : index
    %c0_11 = arith.constant 0 : index
    %12 = vector.load %arg6[%c0_10, %c0_11] : memref<16x128xf32, #tpu.memory_space<vmem>>, vector<16x128xf32>
    tpu.vector_store %arg6[%c0_10, %c0_11], %11 {strides = array<i32>} : memref<16x128xf32, #tpu.memory_space<vmem>>, vector<16x128xf32>,
    %c0_i32_12 = arith.constant 0 : i32
    %13 = arith.cmpi eq, %arg1, %c0_i32_12 : i32
    %14 = arith.extui %13 : i1 to i32
    %c0_i32_13 = arith.constant 0 : i32
    %15 = arith.cmpi ne, %14, %c0_i32_13 : i32
    scf.if %15 {
      %c0_14 = arith.constant 0 : index
      %c0_15 = arith.constant 0 : index
      %16 = vector.load %arg6[%c0_14, %c0_15] : memref<16x128xf32, #tpu.memory_space<vmem>>, vector<16x128xf32>
      %c0_16 = arith.constant 0 : index
      %c0_17 = arith.constant 0 : index
      %17 = vector.load %arg5[%c0_16, %c0_17] : memref<16x128xf32, #tpu.memory_space<vmem>>, vector<16x128xf32>
      tpu.vector_store %arg5[%c0_16, %c0_17], %16 {strides = array<i32>} : memref<16x128xf32, #tpu.memory_space<vmem>>, vector<16x128xf32>,
    } else {
    }
    return
  }
  func.func @transform_0(%arg0: i32, %arg1: i32) -> (i32, i32) {
    %c0_i32 = arith.constant 0 : i32
    %c0_i32_0 = arith.constant 0 : i32
    return %arg0, %c0_i32 : i32, i32
  }
  func.func @transform_1(%arg0: i32, %arg1: i32) -> (i32, i32) {
    %c0_i32 = arith.constant 0 : i32
    %c0_i32_0 = arith.constant 0 : i32
    return %c0_i32, %arg1 : i32, i32
  }
  func.func @transform_2(%arg0: i32, %arg1: i32) -> (i32, i32) {
    %c0_i32 = arith.constant 0 : i32
    %c0_i32_0 = arith.constant 0 : i32
    return %arg1, %c0_i32 : i32, i32
  }
  func.func @transform_3(%arg0: i32, %arg1: i32) -> (i32, i32) {
    %c0_i32 = arith.constant 0 : i32
    %c0_i32_0 = arith.constant 0 : i32
    return %arg0, %c0_i32 : i32, i32
  }
}

</mosaic_0001>

<bundles_post_ra>
// kernel: tpu_custom_call.1
= control target key start
LH: loop header
LB: loop body
LE: loop exit
PB: predicated region body
PF: predicated region fallthrough
CT: control target
= control target key end

     0   :  { %8 = vsyncpa [#allocation4], 0  ;;  %s642_s0 = inlined_call_operand.hbm [shape: f32[16,128], index: 0, kind: input, shape index: {}]   ;;  %s643_s1 = inlined_call_operand.hbm [shape: f32[128,128], index: 1, kind: input, shape index: {}]   ;;  %s644_s2 = inlined_call_operand.hbm [shape: f32[128,128], index: 2, kind: input, shape index: {}]   ;;  %s645_s3 = inlined_call_operand.hbm [shape: f32[16,128], index: 3, kind: output, shape index: {}]  }
   0x1   :  { %9 = vsyncpa [#allocation7], 0 }
   0x2   :  { %10 = vsyncpa [#allocation5], 0  ;;  %s549_s12 = smov [#allocation6]   ;;  %s550_s14 = smov [#allocation3]  }
   0x3   :  { %s28_s13 = sshll.u32 %s549_s12, 4  ;;  %s16_s15 = sshll.u32 %s550_s14, 4  ;;  %s29_s13 = int_to_ptr.vmem [resolvable:$true] %s28_s13  ;;  %s575_s15 = int_to_ptr.vmem [resolvable:$true] %s16_s15 }
   0x4   :  { %s455_s18 = scalar_lea.hbm %s643_s1, 2048 }
   0x5   :  { %p456_p0 = scmp.ne.s32.totalorder %s643_s1, %s455_s18  ;;  %p459_p1 = scmp.lt.u32.totalorder %s455_s18, %s643_s1 }
   0x7   :  { %p461_p2 = pnand %p459_p1, %p456_p0 }
   0x9   :  { %464 = shalt.err (!%p461_p2)
}
   0xa   :  { %s465_s23 = scalar_lea.vmem %s29_s13, 2048  ;;  %p470_p4 = scmp.lt.s32.totalorder %s29_s13, %s29_s13 }
   0xb   :  { %p466_p3 = scmp.ne.s32.totalorder %s29_s13, %s465_s23  ;;  %p471_p5 = scmp.lt.s32.totalorder %s465_s23, %s465_s23 }
   0xd   :  { %p472_p6 = por %p471_p5, %p470_p4 }
   0xf   :  { %p473_p7 = pnand %p472_p6, %p466_p3 }
  0x11   :  { %476 = shalt.err (!%p473_p7)
}
  0x12   :  { %s551_s24 = smov 128   ;;  %s552_s25 = smov 8  }
  0x13   :  { %34 = dma.hbm_to_vmem [thread:$0]  %s643_s1, 2048, %s29_s13, [#allocation7], %s551_s24, %s551_s24, %s552_s25  }
  0x14   :  { %s477_s30 = scalar_lea.hbm %s642_s0, 256 }
  0x15   :  { %p478_p8 = scmp.ne.s32.totalorder %s642_s0, %s477_s30  ;;  %p481_p9 = scmp.lt.u32.totalorder %s477_s30, %s642_s0 }
  0x17   :  { %p483_p10 = pnand %p481_p9, %p478_p8 }
  0x19   :  { %486 = shalt.err (!%p483_p10)
}
  0x1a   :  { %s487_s8 = scalar_lea.vmem %s575_s15, 256  ;;  %p492_p12 = scmp.lt.s32.totalorder %s575_s15, %s575_s15 }
  0x1b   :  { %p488_p11 = scmp.ne.s32.totalorder %s575_s15, %s487_s8  ;;  %p493_p13 = scmp.lt.s32.totalorder %s487_s8, %s487_s8 }
  0x1d   :  { %p494_p0 = por %p493_p13, %p492_p12 }
  0x1f   :  { %p495_p1 = pnand %p494_p0, %p488_p11 }
  0x21   :  { %498 = shalt.err (!%p495_p1)
}
  0x22   :  { %22 = dma.hbm_to_vmem [thread:$0]  %s642_s0, 256, %s575_s15, [#allocation4], %s551_s24, %s551_s24, %s552_s25  }
  0x23   :  { %s553_s10 = smov [#allocation8]   ;;  %s499_s14 = scalar_lea.hbm %s644_s2, 2048 }
  0x24   :  { %s40_s11 = sshll.u32 %s553_s10, 4  ;;  %p500_p2 = scmp.ne.s32.totalorder %s644_s2, %s499_s14  ;;  %s41_s11 = int_to_ptr.vmem [resolvable:$true] %s40_s11 }
  0x25   :  { %p503_p3 = scmp.lt.u32.totalorder %s499_s14, %s644_s2 }
  0x27   :  { %p505_p4 = pnand %p503_p3, %p500_p2 }
  0x29   :  { %508 = shalt.err (!%p505_p4)
}
  0x2a   :  { %s509_s20 = scalar_lea.vmem %s41_s11, 2048  ;;  %p514_p6 = scmp.lt.s32.totalorder %s41_s11, %s41_s11 }
  0x2b   :  { %p510_p5 = scmp.ne.s32.totalorder %s41_s11, %s509_s20  ;;  %p515_p7 = scmp.lt.s32.totalorder %s509_s20, %s509_s20 }
  0x2d   :  { %p516_p8 = por %p515_p7, %p514_p6 }
  0x2f   :  { %p517_p9 = pnand %p516_p8, %p510_p5 }
  0x31   :  { %520 = shalt.err (!%p517_p9)
}
  0x32   :  { %46 = dma.hbm_to_vmem [thread:$0]  %s644_s2, 2048, %s41_s11, [#allocation7], %s551_s24, %s551_s24, %s552_s25  }
  0x33   :  { %543 = dma.done.wait [#allocation4], 256  }
  0x34   :  { %544 = vsyncadd [#allocation4], 4294967040 }
  0x35   :  { %545 = dma.done.wait [#allocation7], 4096  }
  0x36   :  { %546 = vsyncadd [#allocation7], 4294963200  ;;  %v64_v0 = vld [vmem:[#allocation6] sm:$0xff]  ;;  %v65_v1 = vld [vmem:[#allocation6 + $0x8] sm:$0xff]  ;;  %s554_s2 = smov [#allocation9]  }
  0x37   :  { %v66_v2 = vld [vmem:[#allocation6 + $0x10] sm:$0xff]  ;;  %v385_v3 = vpack.c.bf16 %v65_v1, %v64_v0  ;;  %v67_v4 = vld [vmem:[#allocation6 + $0x18] sm:$0xff]  ;;  %v68_v6 = vld [vmem:[#allocation6 + $0x20] sm:$0xff]  ;;  %s266_s21 = sshll.u32 %s554_s2, 4  ;;  %s267_s21 = int_to_ptr.vmem [resolvable:$true] %s266_s21 }
  0x38   :  { %v389_v5 = vpack.c.bf16 %v67_v4, %v66_v2  ;;  %v69_v7 = vld [vmem:[#allocation6 + $0x28] sm:$0xff]  ;;  %v70_v9 = vld [vmem:[#allocation6 + $0x30] sm:$0xff]  ;;  %v71_v10 = vld [vmem:[#allocation6 + $0x38] sm:$0xff]  ;;  %s521_s22 = scalar_lea.vmem %s267_s21, 256  ;;  %p526_p11 = scmp.lt.s32.totalorder %s267_s21, %s267_s21 }
  0x39   :  { %386 = vmatprep.subr.bf16.mxu0 %v385_v3  ;;  %v393_v8 = vpack.c.bf16 %v69_v7, %v68_v6  ;;  %v62_v11 = vld [vmem:[#allocation3] sm:$0xff]  ;;  %v159_v12 = vld [vmem:[#allocation8] sm:$0xff]  ;;  %v160_v13 = vld [vmem:[#allocation8 + $0x8] sm:$0xff]  ;;  %v397_v20 = vpack.c.bf16 %v71_v10, %v70_v9  ;;  %p522_p10 = scmp.ne.s32.totalorder %s267_s21, %s521_s22  ;;  %p527_p12 = scmp.lt.s32.totalorder %s521_s22, %s521_s22 }
  0x3a   :  { %388 = vmatpush3.bf16.msra.mxu0 %v385_v3  ;;  %347 = vmatprep.mubr.f32.mxu0 %v62_v11  ;;  %v161_v14 = vld [vmem:[#allocation8 + $0x10] sm:$0xff]  ;;  %v417_v15 = vpack.c.bf16 %v160_v13, %v159_v12  ;;  %v162_v16 = vld [vmem:[#allocation8 + $0x18] sm:$0xff]  ;;  %v163_v18 = vld [vmem:[#allocation8 + $0x20] sm:$0xff] }
  0x3b   :  { %390 = vmatprep.subr.bf16.mxu0 %v389_v5  ;;  %v421_v17 = vpack.c.bf16 %v162_v16, %v161_v14  ;;  %v164_v19 = vld [vmem:[#allocation8 + $0x28] sm:$0xff]  ;;  %v72_v21 = vld [vmem:[#allocation6 + $0x40] sm:$0xff]  ;;  %v165_v24 = vld [vmem:[#allocation8 + $0x30] sm:$0xff]  ;;  %p528_p13 = por %p527_p12, %p526_p11 }
  0x3c   :  { %418 = vmatprep.subr.bf16.mxu1 %v417_v15  ;;  %v73_v22 = vld [vmem:[#allocation6 + $0x48] sm:$0xff]  ;;  %v425_v23 = vpack.c.bf16 %v164_v19, %v163_v18  ;;  %v166_v25 = vld [vmem:[#allocation8 + $0x38] sm:$0xff]  ;;  %v74_v27 = vld [vmem:[#allocation6 + $0x50] sm:$0xff] }
  0x3d   :  { %420 = vmatpush3.bf16.msra.mxu1 %v417_v15  ;;  %v401_v26 = vpack.c.bf16 %v73_v22, %v72_v21  ;;  %v75_v28 = vld [vmem:[#allocation6 + $0x58] sm:$0xff]  ;;  %v429_v29 = vpack.c.bf16 %v166_v25, %v165_v24  ;;  %v167_v30 = vld [vmem:[#allocation8 + $0x40] sm:$0xff]  ;;  %v168_v31 = vld [vmem:[#allocation8 + $0x48] sm:$0xff]  ;;  %p529_p0 = pnand %p528_p13, %p522_p10 }
  0x3e   :  { %392 = vmatpush3.bf16.msra.mxu0 %v389_v5  ;;  %422 = vmatprep.subr.bf16.mxu1 %v421_v17  ;;  %v405_v32 = vpack.c.bf16 %v75_v28, %v74_v27  ;;  %v76_v33 = vld [vmem:[#allocation6 + $0x60] sm:$0xff]  ;;  %v77_v34 = vld [vmem:[#allocation6 + $0x68] sm:$0xff]  ;;  %v433_v35 = vpack.c.bf16 %v168_v31, %v167_v30  ;;  %v169_v36 = vld [vmem:[#allocation8 + $0x50] sm:$0xff] }
  0x3f   :  { %394 = vmatprep.subr.bf16.mxu0 %v393_v8  ;;  %v170_v37 = vld [vmem:[#allocation8 + $0x58] sm:$0xff]  ;;  %v409_v38 = vpack.c.bf16 %v77_v34, %v76_v33  ;;  %v78_v39 = vld [vmem:[#allocation6 + $0x70] sm:$0xff]  ;;  %v171_v42 = vld [vmem:[#allocation8 + $0x60] sm:$0xff] }
  0x40   :  { %v79_v40 = vld [vmem:[#allocation6 + $0x78] sm:$0xff]  ;;  %v437_v41 = vpack.c.bf16 %v170_v37, %v169_v36  ;;  %v172_v43 = vld [vmem:[#allocation8 + $0x68] sm:$0xff]  ;;  %v173_v47 = vld [vmem:[#allocation8 + $0x70] sm:$0xff] }
  0x41   :  { %424 = vmatpush3.bf16.msra.mxu1 %v421_v17  ;;  %v413_v44 = vpack.c.bf16 %v79_v40, %v78_v39  ;;  %v441_v45 = vpack.c.bf16 %v172_v43, %v171_v42  ;;  %v63_v46 = vld [vmem:[#allocation3 + $0x8] sm:$0xff] }
  0x42   :  { %396 = vmatpush3.bf16.msra.mxu0 %v393_v8  ;;  %426 = vmatprep.subr.bf16.mxu1 %v425_v23  ;;  %v174_v48 = vld [vmem:[#allocation8 + $0x78] sm:$0xff] }
  0x43   :  { %398 = vmatprep.subr.bf16.mxu0 %v397_v20  ;;  %v445_v49 = vpack.c.bf16 %v174_v48, %v173_v47 }
  0x45   :  { %428 = vmatpush3.bf16.msra.mxu1 %v425_v23 }
  0x46   :  { %400 = vmatpush3.bf16.msra.mxu0 %v397_v20  ;;  %430 = vmatprep.subr.bf16.mxu1 %v429_v29 }
  0x47   :  { %402 = vmatprep.subr.bf16.mxu0 %v401_v26 }
  0x49   :  { %432 = vmatpush3.bf16.msra.mxu1 %v429_v29 }
  0x4a   :  { %404 = vmatpush3.bf16.msra.mxu0 %v401_v26  ;;  %434 = vmatprep.subr.bf16.mxu1 %v433_v35 }
  0x4b   :  { %406 = vmatprep.subr.bf16.mxu0 %v405_v32 }
  0x4d   :  { %436 = vmatpush3.bf16.msra.mxu1 %v433_v35 }
  0x4e   :  { %408 = vmatpush3.bf16.msra.mxu0 %v405_v32  ;;  %438 = vmatprep.subr.bf16.mxu1 %v437_v41 }
  0x4f   :  { %410 = vmatprep.subr.bf16.mxu0 %v409_v38 }
  0x51   :  { %440 = vmatpush3.bf16.msra.mxu1 %v437_v41 }
  0x52   :  { %412 = vmatpush3.bf16.msra.mxu0 %v409_v38  ;;  %442 = vmatprep.subr.bf16.mxu1 %v441_v45 }
  0x53   :  { %414 = vmatprep.subr.bf16.mxu0 %v413_v44 }
  0x55   :  { %444 = vmatpush3.bf16.msra.mxu1 %v441_v45 }
  0x56   :  { %416 = vmatpush3.bf16.msra.mxu0 %v413_v44  ;;  %446 = vmatprep.subr.bf16.mxu1 %v445_v49 }
  0x59   :  { %348 = vmatmul.mubr.f32.vlgmr.msra.gmra.mrb[0].mxu0 %v63_v46  ;;  %448 = vmatpush3.bf16.msra.mxu1 %v445_v49 }
 0x12c   :  { %v349_v50 = vpop.f32.mrb[0].mxu0 }
 0x12d   :  { %v146_v51 = vpop.f32.mrb[1].mxu0  ;;  %v156_v53 = vmax.f32 %v349_v50, 0.0 }
 0x12e   :  { %v155_v52 = vmax.f32 %v146_v51, 0.0 }
 0x130   :  { %382 = vmatprep.mubr.f32.mxu1 %v155_v52 }
 0x131   :  { %383 = vmatmul.mubr.f32.vlgmr.msra.gmra.mrb[0].mxu1 %v156_v53 }
 0x204   :  { %v384_v54 = vpop.f32.mrb[0].mxu1 }
 0x205   :  { %260 = vst [vmem:[#allocation9 + $0x8] sm:$0xff] %v384_v54  ;;  %v241_v55 = vpop.f32.mrb[1].mxu1 }
 0x206   :  { %259 = vst [vmem:[#allocation9] sm:$0xff] %v241_v55 }
 0x207   :  { %532 = shalt.err (!%p529_p0)
}
 0x208   :  { %s533_s27 = scalar_lea.hbm %s645_s3, 256 }
 0x209   :  { %p534_p1 = scmp.ne.s32.totalorder %s645_s3, %s533_s27  ;;  %p537_p2 = scmp.lt.u32.totalorder %s533_s27, %s645_s3 }
 0x20b   :  { %p539_p3 = pnand %p537_p2, %p534_p1 }
 0x20d   :  { %542 = shalt.err (!%p539_p3)
}
 0x20e   :  { %272 = dma.vmem_to_hbm [thread:$0]  %s267_s21, 256, %s645_s3, [#allocation5], %s551_s24, %s551_s24, %s552_s25  }
 0x20f   :  { %547 = dma.done.wait [#allocation5], 256  }
 0x210   :  { %548 = vsyncadd [#allocation5], 4294967040 }
 0x211   :  { %276 = vsyncpa [#allocation4], 1 }
 0x212   :  { %277 = vsyncpa [#allocation7], 1 }
 0x213   :  { %278 = vsyncpa [#allocation5], 1 }

// kernel: tpu_custom_call.1
= control target key start
LH: loop header
LB: loop body
LE: loop exit
PB: predicated region body
PF: predicated region fallthrough
CT: control target
= control target key end

     0   :  { %8 = vsyncpa [#allocation4], 0  ;;  %s642_s0 = inlined_call_operand.hbm [shape: f32[16,128], index: 0, kind: input, shape index: {}]   ;;  %s643_s1 = inlined_call_operand.hbm [shape: f32[128,128], index: 1, kind: input, shape index: {}]   ;;  %s644_s2 = inlined_call_operand.hbm [shape: f32[128,128], index: 2, kind: input, shape index: {}]   ;;  %s645_s3 = inlined_call_operand.hbm [shape: f32[16,128], index: 3, kind: output, shape index: {}]  }
   0x1   :  { %9 = vsyncpa [#allocation7], 0 }
   0x2   :  { %10 = vsyncpa [#allocation5], 0  ;;  %s549_s12 = smov [#allocation6]   ;;  %s550_s14 = smov [#allocation3]  }
   0x3   :  { %s28_s13 = sshll.u32 %s549_s12, 4  ;;  %s16_s15 = sshll.u32 %s550_s14, 4  ;;  %s29_s13 = int_to_ptr.vmem [resolvable:$true] %s28_s13  ;;  %s575_s15 = int_to_ptr.vmem [resolvable:$true] %s16_s15 }
   0x4   :  { %s455_s18 = scalar_lea.hbm %s643_s1, 2048 }
   0x5   :  { %p456_p0 = scmp.ne.s32.totalorder %s643_s1, %s455_s18  ;;  %p459_p1 = scmp.lt.u32.totalorder %s455_s18, %s643_s1 }
   0x7   :  { %p461_p2 = pnand %p459_p1, %p456_p0 }
   0x9   :  { %464 = shalt.err (!%p461_p2)
}
   0xa   :  { %s465_s23 = scalar_lea.vmem %s29_s13, 2048  ;;  %p470_p4 = scmp.lt.s32.totalorder %s29_s13, %s29_s13 }
   0xb   :  { %p466_p3 = scmp.ne.s32.totalorder %s29_s13, %s465_s23  ;;  %p471_p5 = scmp.lt.s32.totalorder %s465_s23, %s465_s23 }
   0xd   :  { %p472_p6 = por %p471_p5, %p470_p4 }
   0xf   :  { %p473_p7 = pnand %p472_p6, %p466_p3 }
  0x11   :  { %476 = shalt.err (!%p473_p7)
}
  0x12   :  { %s551_s24 = smov 128   ;;  %s552_s25 = smov 8  }
  0x13   :  { %34 = dma.hbm_to_vmem [thread:$0]  %s643_s1, 2048, %s29_s13, [#allocation7], %s551_s24, %s551_s24, %s552_s25  }
  0x14   :  { %s477_s30 = scalar_lea.hbm %s642_s0, 256 }
  0x15   :  { %p478_p8 = scmp.ne.s32.totalorder %s642_s0, %s477_s30  ;;  %p481_p9 = scmp.lt.u32.totalorder %s477_s30, %s642_s0 }
  0x17   :  { %p483_p10 = pnand %p481_p9, %p478_p8 }
  0x19   :  { %486 = shalt.err (!%p483_p10)
}
  0x1a   :  { %s487_s8 = scalar_lea.vmem %s575_s15, 256  ;;  %p492_p12 = scmp.lt.s32.totalorder %s575_s15, %s575_s15 }
  0x1b   :  { %p488_p11 = scmp.ne.s32.totalorder %s575_s15, %s487_s8  ;;  %p493_p13 = scmp.lt.s32.totalorder %s487_s8, %s487_s8 }
  0x1d   :  { %p494_p0 = por %p493_p13, %p492_p12 }
  0x1f   :  { %p495_p1 = pnand %p494_p0, %p488_p11 }
  0x21   :  { %498 = shalt.err (!%p495_p1)
}
  0x22   :  { %22 = dma.hbm_to_vmem [thread:$0]  %s642_s0, 256, %s575_s15, [#allocation4], %s551_s24, %s551_s24, %s552_s25  }
  0x23   :  { %s553_s10 = smov [#allocation8]   ;;  %s499_s14 = scalar_lea.hbm %s644_s2, 2048 }
  0x24   :  { %s40_s11 = sshll.u32 %s553_s10, 4  ;;  %p500_p2 = scmp.ne.s32.totalorder %s644_s2, %s499_s14  ;;  %s41_s11 = int_to_ptr.vmem [resolvable:$true] %s40_s11 }
  0x25   :  { %p503_p3 = scmp.lt.u32.totalorder %s499_s14, %s644_s2 }
  0x27   :  { %p505_p4 = pnand %p503_p3, %p500_p2 }
  0x29   :  { %508 = shalt.err (!%p505_p4)
}
  0x2a   :  { %s509_s20 = scalar_lea.vmem %s41_s11, 2048  ;;  %p514_p6 = scmp.lt.s32.totalorder %s41_s11, %s41_s11 }
  0x2b   :  { %p510_p5 = scmp.ne.s32.totalorder %s41_s11, %s509_s20  ;;  %p515_p7 = scmp.lt.s32.totalorder %s509_s20, %s509_s20 }
  0x2d   :  { %p516_p8 = por %p515_p7, %p514_p6 }
  0x2f   :  { %p517_p9 = pnand %p516_p8, %p510_p5 }
  0x31   :  { %520 = shalt.err (!%p517_p9)
}
  0x32   :  { %46 = dma.hbm_to_vmem [thread:$0]  %s644_s2, 2048, %s41_s11, [#allocation7], %s551_s24, %s551_s24, %s552_s25  }
  0x33   :  { %543 = dma.done.wait [#allocation4], 256  }
  0x34   :  { %544 = vsyncadd [#allocation4], 4294967040 }
  0x35   :  { %545 = dma.done.wait [#allocation7], 4096  }
  0x36   :  { %546 = vsyncadd [#allocation7], 4294963200  ;;  %v64_v0 = vld [vmem:[#allocation6] sm:$0xff]  ;;  %v65_v1 = vld [vmem:[#allocation6 + $0x8] sm:$0xff]  ;;  %s554_s2 = smov [#allocation9]  }
  0x37   :  { %v66_v2 = vld [vmem:[#allocation6 + $0x10] sm:$0xff]  ;;  %v385_v3 = vpack.c.bf16 %v65_v1, %v64_v0  ;;  %v67_v4 = vld [vmem:[#allocation6 + $0x18] sm:$0xff]  ;;  %v68_v6 = vld [vmem:[#allocation6 + $0x20] sm:$0xff]  ;;  %s266_s21 = sshll.u32 %s554_s2, 4  ;;  %s267_s21 = int_to_ptr.vmem [resolvable:$true] %s266_s21 }
  0x38   :  { %v389_v5 = vpack.c.bf16 %v67_v4, %v66_v2  ;;  %v69_v7 = vld [vmem:[#allocation6 + $0x28] sm:$0xff]  ;;  %v70_v9 = vld [vmem:[#allocation6 + $0x30] sm:$0xff]  ;;  %v71_v10 = vld [vmem:[#allocation6 + $0x38] sm:$0xff]  ;;  %s521_s22 = scalar_lea.vmem %s267_s21, 256  ;;  %p526_p11 = scmp.lt.s32.totalorder %s267_s21, %s267_s21 }
  0x39   :  { %386 = vmatprep.subr.bf16.mxu0 %v385_v3  ;;  %v393_v8 = vpack.c.bf16 %v69_v7, %v68_v6  ;;  %v62_v11 = vld [vmem:[#allocation3] sm:$0xff]  ;;  %v159_v12 = vld [vmem:[#allocation8] sm:$0xff]  ;;  %v160_v13 = vld [vmem:[#allocation8 + $0x8] sm:$0xff]  ;;  %v397_v20 = vpack.c.bf16 %v71_v10, %v70_v9  ;;  %p522_p10 = scmp.ne.s32.totalorder %s267_s21, %s521_s22  ;;  %p527_p12 = scmp.lt.s32.totalorder %s521_s22, %s521_s22 }
  0x3a   :  { %388 = vmatpush3.bf16.msra.mxu0 %v385_v3  ;;  %347 = vmatprep.mubr.f32.mxu0 %v62_v11  ;;  %v161_v14 = vld [vmem:[#allocation8 + $0x10] sm:$0xff]  ;;  %v417_v15 = vpack.c.bf16 %v160_v13, %v159_v12  ;;  %v162_v16 = vld [vmem:[#allocation8 + $0x18] sm:$0xff]  ;;  %v163_v18 = vld [vmem:[#allocation8 + $0x20] sm:$0xff] }
  0x3b   :  { %390 = vmatprep.subr.bf16.mxu0 %v389_v5  ;;  %v421_v17 = vpack.c.bf16 %v162_v16, %v161_v14  ;;  %v164_v19 = vld [vmem:[#allocation8 + $0x28] sm:$0xff]  ;;  %v72_v21 = vld [vmem:[#allocation6 + $0x40] sm:$0xff]  ;;  %v165_v24 = vld [vmem:[#allocation8 + $0x30] sm:$0xff]  ;;  %p528_p13 = por %p527_p12, %p526_p11 }
  0x3c   :  { %418 = vmatprep.subr.bf16.mxu1 %v417_v15  ;;  %v73_v22 = vld [vmem:[#allocation6 + $0x48] sm:$0xff]  ;;  %v425_v23 = vpack.c.bf16 %v164_v19, %v163_v18  ;;  %v166_v25 = vld [vmem:[#allocation8 + $0x38] sm:$0xff]  ;;  %v74_v27 = vld [vmem:[#allocation6 + $0x50] sm:$0xff] }
  0x3d   :  { %420 = vmatpush3.bf16.msra.mxu1 %v417_v15  ;;  %v401_v26 = vpack.c.bf16 %v73_v22, %v72_v21  ;;  %v75_v28 = vld [vmem:[#allocation6 + $0x58] sm:$0xff]  ;;  %v429_v29 = vpack.c.bf16 %v166_v25, %v165_v24  ;;  %v167_v30 = vld [vmem:[#allocation8 + $0x40] sm:$0xff]  ;;  %v168_v31 = vld [vmem:[#allocation8 + $0x48] sm:$0xff]  ;;  %p529_p0 = pnand %p528_p13, %p522_p10 }
  0x3e   :  { %392 = vmatpush3.bf16.msra.mxu0 %v389_v5  ;;  %422 = vmatprep.subr.bf16.mxu1 %v421_v17  ;;  %v405_v32 = vpack.c.bf16 %v75_v28, %v74_v27  ;;  %v76_v33 = vld [vmem:[#allocation6 + $0x60] sm:$0xff]  ;;  %v77_v34 = vld [vmem:[#allocation6 + $0x68] sm:$0xff]  ;;  %v433_v35 = vpack.c.bf16 %v168_v31, %v167_v30  ;;  %v169_v36 = vld [vmem:[#allocation8 + $0x50] sm:$0xff] }
  0x3f   :  { %394 = vmatprep.subr.bf16.mxu0 %v393_v8  ;;  %v170_v37 = vld [vmem:[#allocation8 + $0x58] sm:$0xff]  ;;  %v409_v38 = vpack.c.bf16 %v77_v34, %v76_v33  ;;  %v78_v39 = vld [vmem:[#allocation6 + $0x70] sm:$0xff]  ;;  %v171_v42 = vld [vmem:[#allocation8 + $0x60] sm:$0xff] }
  0x40   :  { %v79_v40 = vld [vmem:[#allocation6 + $0x78] sm:$0xff]  ;;  %v437_v41 = vpack.c.bf16 %v170_v37, %v169_v36  ;;  %v172_v43 = vld [vmem:[#allocation8 + $0x68] sm:$0xff]  ;;  %v173_v47 = vld [vmem:[#allocation8 + $0x70] sm:$0xff] }
  0x41   :  { %424 = vmatpush3.bf16.msra.mxu1 %v421_v17  ;;  %v413_v44 = vpack.c.bf16 %v79_v40, %v78_v39  ;;  %v441_v45 = vpack.c.bf16 %v172_v43, %v171_v42  ;;  %v63_v46 = vld [vmem:[#allocation3 + $0x8] sm:$0xff] }
  0x42   :  { %396 = vmatpush3.bf16.msra.mxu0 %v393_v8  ;;  %426 = vmatprep.subr.bf16.mxu1 %v425_v23  ;;  %v174_v48 = vld [vmem:[#allocation8 + $0x78] sm:$0xff] }
  0x43   :  { %398 = vmatprep.subr.bf16.mxu0 %v397_v20  ;;  %v445_v49 = vpack.c.bf16 %v174_v48, %v173_v47 }
  0x45   :  { %428 = vmatpush3.bf16.msra.mxu1 %v425_v23 }
  0x46   :  { %400 = vmatpush3.bf16.msra.mxu0 %v397_v20  ;;  %430 = vmatprep.subr.bf16.mxu1 %v429_v29 }
  0x47   :  { %402 = vmatprep.subr.bf16.mxu0 %v401_v26 }
  0x49   :  { %432 = vmatpush3.bf16.msra.mxu1 %v429_v29 }
  0x4a   :  { %404 = vmatpush3.bf16.msra.mxu0 %v401_v26  ;;  %434 = vmatprep.subr.bf16.mxu1 %v433_v35 }
  0x4b   :  { %406 = vmatprep.subr.bf16.mxu0 %v405_v32 }
  0x4d   :  { %436 = vmatpush3.bf16.msra.mxu1 %v433_v35 }
  0x4e   :  { %408 = vmatpush3.bf16.msra.mxu0 %v405_v32  ;;  %438 = vmatprep.subr.bf16.mxu1 %v437_v41 }
  0x4f   :  { %410 = vmatprep.subr.bf16.mxu0 %v409_v38 }
  0x51   :  { %440 = vmatpush3.bf16.msra.mxu1 %v437_v41 }
  0x52   :  { %412 = vmatpush3.bf16.msra.mxu0 %v409_v38  ;;  %442 = vmatprep.subr.bf16.mxu1 %v441_v45 }
  0x53   :  { %414 = vmatprep.subr.bf16.mxu0 %v413_v44 }
  0x55   :  { %444 = vmatpush3.bf16.msra.mxu1 %v441_v45 }
  0x56   :  { %416 = vmatpush3.bf16.msra.mxu0 %v413_v44  ;;  %446 = vmatprep.subr.bf16.mxu1 %v445_v49 }
  0x59   :  { %348 = vmatmul.mubr.f32.vlgmr.msra.gmra.mrb[0].mxu0 %v63_v46  ;;  %448 = vmatpush3.bf16.msra.mxu1 %v445_v49 }
 0x12c   :  { %v349_v50 = vpop.f32.mrb[0].mxu0 }
 0x12d   :  { %v146_v51 = vpop.f32.mrb[1].mxu0  ;;  %v156_v53 = vmax.f32 %v349_v50, 0.0 }
 0x12e   :  { %v155_v52 = vmax.f32 %v146_v51, 0.0 }
 0x130   :  { %382 = vmatprep.mubr.f32.mxu1 %v155_v52 }
 0x131   :  { %383 = vmatmul.mubr.f32.vlgmr.msra.gmra.mrb[0].mxu1 %v156_v53 }
 0x204   :  { %v384_v54 = vpop.f32.mrb[0].mxu1 }
 0x205   :  { %260 = vst [vmem:[#allocation9 + $0x8] sm:$0xff] %v384_v54  ;;  %v241_v55 = vpop.f32.mrb[1].mxu1 }
 0x206   :  { %259 = vst [vmem:[#allocation9] sm:$0xff] %v241_v55 }
 0x207   :  { %532 = shalt.err (!%p529_p0)
}
 0x208   :  { %s533_s27 = scalar_lea.hbm %s645_s3, 256 }
 0x209   :  { %p534_p1 = scmp.ne.s32.totalorder %s645_s3, %s533_s27  ;;  %p537_p2 = scmp.lt.u32.totalorder %s533_s27, %s645_s3 }
 0x20b   :  { %p539_p3 = pnand %p537_p2, %p534_p1 }
 0x20d   :  { %542 = shalt.err (!%p539_p3)
}
 0x20e   :  { %272 = dma.vmem_to_hbm [thread:$0]  %s267_s21, 256, %s645_s3, [#allocation5], %s551_s24, %s551_s24, %s552_s25  }
 0x20f   :  { %547 = dma.done.wait [#allocation5], 256  }
 0x210   :  { %548 = vsyncadd [#allocation5], 4294967040 }
 0x211   :  { %276 = vsyncpa [#allocation4], 1 }
 0x212   :  { %277 = vsyncpa [#allocation7], 1 }
 0x213   :  { %278 = vsyncpa [#allocation5], 1 }

</bundles_post_ra>
